<compile_context>
chip_gen: v7x
topology: tpu7x:2x2x1
jax: 0.10.0
libtpu: 0.0.40
codegen_flags: <defaults>
</compile_context>

<pallas_src>
import functools

import jax
import jax.numpy as jnp
from jax.experimental import pallas as pl
from jax.experimental.pallas import tpu as pltpu


def _round_up(x: int, m: int) -> int:
    return (x + m - 1) // m * m


def _patch_embed_kernel(x_ref, w_ref, b_ref, o_ref):
    # x_ref: (TM, K)  tile of flattened patches
    # w_ref: (K, emb) projection weight (VMEM-resident across the grid)
    # b_ref: (1, emb) bias
    # o_ref: (TM, emb) patch-embedding tile
    acc = jnp.dot(x_ref[...], w_ref[...], preferred_element_type=jnp.float32)
    o_ref[...] = (acc + b_ref[...].astype(jnp.float32)).astype(o_ref.dtype)


def _vmem_budgets():
    """Generation-gated (budget_for_tiling, vmem_limit_bytes)."""
    try:
        cap = pltpu.get_tpu_info().vmem_capacity_bytes
    except Exception:
        cap = 64 * 1024 * 1024  # conservative fallback (v7x-sized)
    # v5e/v6e (128 MiB) -> 96 MiB limit; v7x (64 MiB) -> 48 MiB limit.
    limit = max(32 * 1024 * 1024, min(cap * 3 // 4, 96 * 1024 * 1024))
    budget = limit * 2 // 3
    return budget, limit


def _choose_tm(M, K, N, dtype_bytes, budget):
    """Largest M tile whose pipelined footprint fits the VMEM budget."""

    def footprint(tm):
        # double-buffered patches + output tiles, double-buffered resident
        # weight + bias (default BlockSpec pipelining keeps 2 copies of each).
        return (2 * tm * (K + N) + 2 * K * N + 2 * N) * dtype_bytes

    tm = 4096
    while tm > 256 and footprint(tm) > budget:
        tm //= 2
    # TODO(synk): if the weight alone exceeds the budget (huge C*ph*pw x emb),
    # add a trailing "arbitrary" K grid axis with a VMEM f32 accumulator.

    if M <= 512:
        # Tiny problem: one block (TM == full M dim), no per-step overhead.
        return M
    if M <= 2 * tm:
        # Guarantee >= 2 grid blocks so v7x's 2 TensorCores both get work.
        return max(256, _round_up(pl.cdiv(M, 2), 256))
    return tm


@functools.partial(jax.jit, static_argnames=("patch_size",))
def patch_embedding(x, weight, bias, patch_size):
    """x: (B, C, H, W) NCHW; weight: (emb, C, ph, pw) OIHW; bias: (emb,).

    Returns (B, H', W', emb) == PyTorch forward (conv + permute(0, 2, 3, 1)).
    """
    B, C, H, W = x.shape
    ph, pw = patch_size
    emb = weight.shape[0]
    Hp, Wp = H // ph, W // pw
    M = B * Hp * Wp
    K = C * ph * pw
    dtype_bytes = jnp.dtype(x.dtype).itemsize

    # --- layout glue (no compute): patchify with K ordered (c, u, v) to match
    # the OIHW weight flatten. No M / K / emb padding anywhere, so the only
    # candidate extra HBM pass is this copy, which allow_input_fusion lets XLA
    # fold into the kernel's input DMA under jit.
    patches = (
        x.reshape(B, C, Hp, ph, Wp, pw)
        .transpose(0, 2, 4, 1, 3, 5)
        .reshape(M, K)
    )
    w_mat = weight.reshape(emb, K).T  # (K, emb), K ordered (c, u, v)
    b_mat = bias.reshape(1, emb)
    # Note: if the surrounding model runs bf16, pass bf16 x/weight — the kernel
    # still accumulates in f32 and halves the dominant HBM traffic.

    budget, vmem_limit = _vmem_budgets()
    TM = _choose_tm(M, K, emb, dtype_bytes, budget)
    grid = (pl.cdiv(M, TM),)

    out = pl.pallas_call(
        _patch_embed_kernel,
        out_shape=jax.ShapeDtypeStruct((M, emb), x.dtype),
        grid_spec=pltpu.PrefetchScalarGridSpec(
            num_scalar_prefetch=0,
            grid=grid,
            in_specs=[
                pl.BlockSpec((TM, K), lambda i: (i, 0)),   # patches tile
                pl.BlockSpec((K, emb), lambda i: (0, 0)),  # resident weight
                pl.BlockSpec((1, emb), lambda i: (0, 0)),  # resident bias
            ],
            out_specs=pl.BlockSpec((TM, emb), lambda i: (i, 0)),
        ),
        compiler_params=pltpu.CompilerParams(
            dimension_semantics=("parallel",),
            allow_input_fusion=[True, False, False],
            vmem_limit_bytes=int(vmem_limit),
        ),
    )(patches, w_mat, b_mat)

    # Contiguous reshape only (free): (B*Hp*Wp, emb) -> (B, Hp, Wp, emb).
    return out.reshape(B, Hp, Wp, emb)


def _reference(x, weight, bias, patch_size):
    ph, pw = patch_size
    ref = jax.lax.conv_general_dilated(
        x, weight, window_strides=(ph, pw), padding="VALID",
        dimension_numbers=("NCHW", "OIHW", "NCHW"),
    ) + bias[None, :, None, None]
    return jnp.transpose(ref, (0, 2, 3, 1))


if __name__ == "__main__":
    key = jax.random.PRNGKey(0)

    # Primary check — module-consistent small shapes:
    #   in_channels=4, patch_size=(8,8), stride=(8,8), emb_size=32, img=(16,16)
    B, C, H, W = 2, 4, 16, 16
    ph, pw = 8, 8
    emb = 32
    k_x, k_w, k_b, k2_x, k2_w, k2_b = jax.random.split(key, 6)

    x = jax.random.normal(k_x, (B, C, H, W), dtype=jnp.float32)
    fan_in = C * ph * pw
    bound = 1.0 / (fan_in ** 0.5)
    weight = jax.random.uniform(k_w, (emb, C, ph, pw), jnp.float32, -bound, bound)
    bias = jax.random.uniform(k_b, (emb,), jnp.float32, -bound, bound)

    out = patch_embedding(x, weight, bias, (ph, pw))
    out = jax.block_until_ready(out)
    ref = _reference(x, weight, bias, (ph, pw))
    assert out.shape == (B, H // ph, W // pw, emb)
    assert jnp.allclose(out, ref, atol=1e-4, rtol=1e-4)

    # Secondary check — exercises the unpadded ragged-K matmul (K = 3*6*6 = 108).
    B2, C2, H2, W2 = 2, 3, 12, 12
    ph2, pw2 = 6, 6
    emb2 = 32
    x2 = jax.random.normal(k2_x, (B2, C2, H2, W2), dtype=jnp.float32)
    fan_in2 = C2 * ph2 * pw2
    bound2 = 1.0 / (fan_in2 ** 0.5)
    weight2 = jax.random.uniform(k2_w, (emb2, C2, ph2, pw2), jnp.float32, -bound2, bound2)
    bias2 = jax.random.uniform(k2_b, (emb2,), jnp.float32, -bound2, bound2)

    out2 = patch_embedding(x2, weight2, bias2, (ph2, pw2))
    out2 = jax.block_until_ready(out2)
    ref2 = _reference(x2, weight2, bias2, (ph2, pw2))
    assert out2.shape == (B2, H2 // ph2, W2 // pw2, emb2)
    assert jnp.allclose(out2, ref2, atol=1e-4, rtol=1e-4)

    print("KERNEL_OK")
</pallas_src>

<mosaic_0001>
module attributes {stable_mosaic.version = 11 : i64} {
  func.func @_patch_embed_kernel(%arg0: i32, %arg1: memref<8x256xf32, #tpu.memory_space<vmem>>, %arg2: memref<256x32xf32, #tpu.memory_space<vmem>>, %arg3: memref<1x32xf32, #tpu.memory_space<vmem>>, %arg4: memref<8x32xf32, #tpu.memory_space<vmem>>) attributes {dimension_semantics = [#tpu.dimension_semantics<parallel>], iteration_bounds = array<i64: 1>, scalar_prefetch = 0 : i64, scratch_operands = 0 : i64, tpu.core_type = #tpu.core_type<tc>, window_params = [{transform_indices = @transform_0, window_bounds = array<i64: 8, 256>}, {pipeline_mode = #tpu.pipeline_mode<synchronous>, transform_indices = @transform_1, window_bounds = array<i64: 256, 32>}, {pipeline_mode = #tpu.pipeline_mode<synchronous>, transform_indices = @transform_2, window_bounds = array<i64: 1, 32>}, {transform_indices = @transform_3, window_bounds = array<i64: 8, 32>}]} {
    %c0 = arith.constant 0 : index
    %c0_0 = arith.constant 0 : index
    %0 = vector.load %arg1[%c0, %c0_0] : memref<8x256xf32, #tpu.memory_space<vmem>>, vector<8x256xf32>
    %c0_1 = arith.constant 0 : index
    %c0_2 = arith.constant 0 : index
    %1 = vector.load %arg2[%c0_1, %c0_2] : memref<256x32xf32, #tpu.memory_space<vmem>>, vector<256x32xf32>
    %cst = arith.constant dense<0.000000e+00> : vector<8x32xf32>
    %2 = tpu.matmul %0, %1, %cst {dimension_numbers = #tpu.dot_dimension_numbers<[1], [0], [0], [1], [0, 0, 1, 1], [], []>} : vector<8x256xf32>, vector<256x32xf32>, vector<8x32xf32> -> vector<8x32xf32>
    %c0_3 = arith.constant 0 : index
    %c0_4 = arith.constant 0 : index
    %3 = vector.load %arg3[%c0_3, %c0_4] : memref<1x32xf32, #tpu.memory_space<vmem>>, vector<1x32xf32>
    %4 = vector.broadcast %3 : vector<1x32xf32> to vector<8x32xf32>
    %5 = arith.addf %2, %4 : vector<8x32xf32>
    %c0_5 = arith.constant 0 : index
    %c0_6 = arith.constant 0 : index
    %6 = vector.load %arg4[%c0_5, %c0_6] : memref<8x32xf32, #tpu.memory_space<vmem>>, vector<8x32xf32>
    tpu.vector_store %arg4[%c0_5, %c0_6], %5 {strides = array<i32>} : memref<8x32xf32, #tpu.memory_space<vmem>>, vector<8x32xf32>,
    return
  }
  func.func @transform_0(%arg0: i32) -> (i32, i32) {
    %c0_i32 = arith.constant 0 : i32
    %c0_i32_0 = arith.constant 0 : i32
    return %arg0, %c0_i32 : i32, i32
  }
  func.func @transform_1(%arg0: i32) -> (i32, i32) {
    %c0_i32 = arith.constant 0 : i32
    %c0_i32_0 = arith.constant 0 : i32
    %c0_i32_1 = arith.constant 0 : i32
    return %c0_i32, %c0_i32_0 : i32, i32
  }
  func.func @transform_2(%arg0: i32) -> (i32, i32) {
    %c0_i32 = arith.constant 0 : i32
    %c0_i32_0 = arith.constant 0 : i32
    %c0_i32_1 = arith.constant 0 : i32
    return %c0_i32, %c0_i32_0 : i32, i32
  }
  func.func @transform_3(%arg0: i32) -> (i32, i32) {
    %c0_i32 = arith.constant 0 : i32
    %c0_i32_0 = arith.constant 0 : i32
    return %arg0, %c0_i32 : i32, i32
  }
}

</mosaic_0001>

<bundles_post_ra>
// kernel: patch_embedding.1
= control target key start
LH: loop header
LB: loop body
LE: loop exit
PB: predicated region body
PF: predicated region fallthrough
CT: control target
= control target key end

     0   :  { %s373_s0 = inlined_call_operand.vmem [shape: f32[8,256], index: 0, kind: input, shape index: {}]   ;;  %s374_s1 = inlined_call_operand.vmem [shape: f32[256,32], index: 1, kind: input, shape index: {}]   ;;  %s375_s2 = inlined_call_operand.vmem [shape: f32[1,32], index: 2, kind: input, shape index: {}]   ;;  %s376_s3 = inlined_call_operand.hbm [shape: f32[8,32], index: 3, kind: output, shape index: {}]  }
   0x1   :  { %v33_v0 = vld [vmem:[%s374_s1 + $0x80] sm:$0xff]  ;;  %v34_v1 = vld [vmem:[%s374_s1 + $0x88] sm:$0xff]  ;;  %v35_v5 = vld [vmem:[%s374_s1 + $0x90] sm:$0xff] }
   0x2   :  { %v17_v2 = vld [vmem:[%s374_s1] sm:$0xff]  ;;  %v178_v3 = vpack.c.bf16 %v34_v1, %v33_v0  ;;  %v18_v4 = vld [vmem:[%s374_s1 + $0x8] sm:$0xff]  ;;  %v36_v6 = vld [vmem:[%s374_s1 + $0x98] sm:$0xff] }
   0x3   :  { %v180_v7 = vpack.c.bf16 %v18_v4, %v17_v2  ;;  %v182_v8 = vpack.c.bf16 %v36_v6, %v35_v5  ;;  %v19_v9 = vld [vmem:[%s374_s1 + $0x10] sm:$0xff]  ;;  %v20_v10 = vld [vmem:[%s374_s1 + $0x18] sm:$0xff]  ;;  %v37_v11 = vld [vmem:[%s374_s1 + $0xa0] sm:$0xff] }
   0x4   :  { %179 = vmatprep.subr.bf16.mxu0 %v178_v3  ;;  %v38_v12 = vld [vmem:[%s374_s1 + $0xa8] sm:$0xff]  ;;  %v184_v13 = vpack.c.bf16 %v20_v10, %v19_v9  ;;  %v21_v15 = vld [vmem:[%s374_s1 + $0x20] sm:$0xff]  ;;  %v39_v17 = vld [vmem:[%s374_s1 + $0xb0] sm:$0xff] }
   0x5   :  { %181 = vmatpush3.bf16.msra.mxu0 %v180_v7  ;;  %v186_v14 = vpack.c.bf16 %v38_v12, %v37_v11  ;;  %v22_v16 = vld [vmem:[%s374_s1 + $0x28] sm:$0xff]  ;;  %v40_v18 = vld [vmem:[%s374_s1 + $0xb8] sm:$0xff]  ;;  %v23_v21 = vld [vmem:[%s374_s1 + $0x30] sm:$0xff] }
   0x6   :  { %183 = vmatprep.subr.bf16.mxu0 %v182_v8  ;;  %v188_v19 = vpack.c.bf16 %v22_v16, %v21_v15  ;;  %v190_v20 = vpack.c.bf16 %v40_v18, %v39_v17  ;;  %v24_v22 = vld [vmem:[%s374_s1 + $0x38] sm:$0xff]  ;;  %v41_v23 = vld [vmem:[%s374_s1 + $0xc0] sm:$0xff]  ;;  %v42_v24 = vld [vmem:[%s374_s1 + $0xc8] sm:$0xff] }
   0x7   :  { %v16_v25 = vld [vmem:[%s373_s0 + $0x8] sm:$0xff] }
   0x8   :  { %120 = vmatprep.mubr.f32.mxu0 %v16_v25 }
   0x9   :  { %185 = vmatpush3.bf16.msra.mxu0 %v184_v13 }
   0xa   :  { %187 = vmatprep.subr.bf16.mxu0 %v186_v14 }
   0xb   :  { %8 = vsyncpa [#allocation3], 0  ;;  %v192_v26 = vpack.c.bf16 %v24_v22, %v23_v21  ;;  %v194_v27 = vpack.c.bf16 %v42_v24, %v41_v23  ;;  %v25_v28 = vld [vmem:[%s374_s1 + $0x40] sm:$0xff]  ;;  %v26_v29 = vld [vmem:[%s374_s1 + $0x48] sm:$0xff]  ;;  %s235_s28 = smov [#allocation2]   ;;  %vm126_vm0 = vcmask 261120  }
   0xc   :  { %v43_v30 = vld [vmem:[%s374_s1 + $0xd0] sm:$0xff]  ;;  %v44_v31 = vld [vmem:[%s374_s1 + $0xd8] sm:$0xff]  ;;  %v196_v32 = vpack.c.bf16 %v26_v29, %v25_v28  ;;  %v45_v36 = vld [vmem:[%s374_s1 + $0xe0] sm:$0xff]  ;;  %s134_s29 = sshll.u32 %s235_s28, 4  ;;  %s135_s29 = int_to_ptr.vmem [resolvable:$true] %s134_s29 }
   0xd   :  { %189 = vmatpush3.bf16.msra.mxu0 %v188_v19  ;;  %v198_v33 = vpack.c.bf16 %v44_v31, %v43_v30  ;;  %v27_v34 = vld [vmem:[%s374_s1 + $0x50] sm:$0xff]  ;;  %v28_v35 = vld [vmem:[%s374_s1 + $0x58] sm:$0xff]  ;;  %v46_v37 = vld [vmem:[%s374_s1 + $0xe8] sm:$0xff]  ;;  %p216_p1 = scmp.lt.s32.totalorder %s135_s29, %s135_s29 }
   0xe   :  { %191 = vmatprep.subr.bf16.mxu0 %v190_v20  ;;  %v200_v38 = vpack.c.bf16 %v28_v35, %v27_v34  ;;  %v202_v39 = vpack.c.bf16 %v46_v37, %v45_v36  ;;  %v29_v40 = vld [vmem:[%s374_s1 + $0x60] sm:$0xff]  ;;  %v30_v41 = vld [vmem:[%s374_s1 + $0x68] sm:$0xff]  ;;  %v47_v42 = vld [vmem:[%s374_s1 + $0xf0] sm:$0xff] }
   0xf   :  { %v48_v43 = vld [vmem:[%s374_s1 + $0xf8] sm:$0xff]  ;;  %v204_v44 = vpack.c.bf16 %v30_v41, %v29_v40  ;;  %v31_v46 = vld [vmem:[%s374_s1 + $0x70] sm:$0xff]  ;;  %v15_v49 = vld [vmem:[%s373_s0] sm:$0xff] }
  0x10   :  { %v206_v45 = vpack.c.bf16 %v48_v43, %v47_v42  ;;  %v32_v47 = vld [vmem:[%s374_s1 + $0x78] sm:$0xff]  ;;  %v142_v51 = vld [vmem:[%s375_s2] ss:$0 sm:$0xff]  ;;  %s211_s1 = scalar_lea.vmem %s135_s29, 128 }
  0x11   :  { %193 = vmatpush3.bf16.msra.mxu0 %v192_v26  ;;  %v208_v48 = vpack.c.bf16 %v32_v47, %v31_v46  ;;  %p212_p0 = scmp.ne.s32.totalorder %s135_s29, %s211_s1  ;;  %p217_p2 = scmp.lt.s32.totalorder %s211_s1, %s211_s1 }
  0x12   :  { %195 = vmatprep.subr.bf16.mxu0 %v194_v27 }
  0x13   :  { %p218_p3 = por %p217_p2, %p216_p1 }
  0x15   :  { %197 = vmatpush3.bf16.msra.mxu0 %v196_v32  ;;  %p219_p4 = pnand %p218_p3, %p212_p0 }
  0x16   :  { %199 = vmatprep.subr.bf16.mxu0 %v198_v33 }
  0x19   :  { %201 = vmatpush3.bf16.msra.mxu0 %v200_v38 }
  0x1a   :  { %203 = vmatprep.subr.bf16.mxu0 %v202_v39 }
  0x1d   :  { %205 = vmatpush3.bf16.msra.mxu0 %v204_v44 }
  0x1e   :  { %207 = vmatprep.subr.bf16.mxu0 %v206_v45 }
  0x21   :  { %209 = vmatpush3.bf16.msra.mxu0 %v208_v48 }
  0x24   :  { %121 = vmatmul.mubr.f32.vlgmr.msra.gmra.mrb[0].mxu0 %v15_v49 }
  0xf7   :  { %v175_v50 = vpop.f32.mrb[0].mxu0 }
  0xf8   :  { %v176_v52 = vpop.f32.mrb[1].mxu0 }
  0xf9   :  { %v177_v53 = vadd.f32 %v176_v52, %v175_v50 }
  0xfb   :  { %v123_v54 = vadd.f32 %v177_v53, %v142_v51 }
  0xfd   :  { %127 = vst.msk [vmem:[#allocation2] sm:$0xff] %vm126_vm0, %v123_v54 }
  0xfe   :  { %222 = shalt.err (!%p219_p4)
}
  0xff   :  { %s223_s4 = scalar_lea.hbm %s376_s3, 128 }
 0x100   :  { %p224_p5 = scmp.ne.s32.totalorder %s376_s3, %s223_s4  ;;  %p227_p6 = scmp.lt.u32.totalorder %s223_s4, %s376_s3 }
 0x102   :  { %p229_p7 = pnand %p227_p6, %p224_p5 }
 0x104   :  { %232 = shalt.err (!%p229_p7)
}
 0x105   :  { %137 = dma.vmem_to_hbm [thread:$0]  %s135_s29, 128, %s376_s3, [#allocation3]  }
 0x106   :  { %233 = dma.done.wait [#allocation3], 128  }
 0x107   :  { %234 = vsyncadd [#allocation3], 4294967168 }
 0x108   :  { %141 = vsyncpa [#allocation3], 1 }

</bundles_post_ra>
